<compile_context>
chip_gen: v7x
topology: tpu7x:2x2x1
jax: 0.10.0
libtpu: 0.0.40
codegen_flags: <defaults>
</compile_context>

<pallas_src>
import functools

import jax
import jax.numpy as jnp
import numpy as np
from jax.experimental import pallas as pl
from jax.experimental.pallas import tpu as pltpu

ETA = 1e-6           # Constants.eta
HIDDEN_DIM = 128     # fixed by the module


def _round_up(x, m):
    return ((x + m - 1) // m) * m


def enc_fnn_kernel(x_ref, w1_ref, b1_ref, wh_ref, bh_ref, out_ref, acc_ref, *,
                   latent_dim):
    """One (TB, TK) x-tile step. K is the reduction grid axis (axis 1)."""
    k = pl.program_id(1)

    @pl.when(k == 0)
    def _():
        acc_ref[...] = jnp.zeros_like(acc_ref)

    # lin1 partial product (MXU, f32 accumulate).
    acc_ref[...] += jnp.dot(x_ref[...], w1_ref[...],
                            preferred_element_type=jnp.float32)

    @pl.when(k == pl.num_programs(1) - 1)
    def _():
        h = jnp.maximum(acc_ref[...] + b1_ref[...].astype(jnp.float32), 0.0)

        # Fused mu|logvar head: single lane-dense matmul (128 x NP).
        y = jnp.dot(h.astype(wh_ref.dtype), wh_ref[...],
                    preferred_element_type=jnp.float32)
        y = y + bh_ref[...].astype(jnp.float32)

        L = latent_dim
        col = jax.lax.broadcasted_iota(jnp.int32, y.shape, 1)
        lv_mask = jnp.logical_and(col >= L, col < 2 * L)

        # Masked softmax over the logvar columns only.
        m = jnp.max(jnp.where(lv_mask, y, -jnp.inf), axis=-1, keepdims=True)
        e = jnp.where(lv_mask, jnp.exp(y - m), 0.0)
        denom = jnp.sum(e, axis=-1, keepdims=True)
        # approx=False keeps the exact f32 softmax (1e-5 check); flip to
        # approx=True (EUP vrcp) if a looser tolerance is acceptable.
        sm = e * pl.reciprocal(denom, approx=False)

        # Columns [0,L): mu, [L,2L): softmax+eta, rest: padding (sliced away).
        out = jnp.where(col < L, y, sm + ETA)
        out_ref[...] = out.astype(out_ref.dtype)


def enc_fnn_forward(x_nchw, params, *, use_bf16=False, batch_tile=256,
                    k_tile=2048):
    """x_nchw: (B, C, H, W). params: w1/b1 (K,128)/(1,128), wmu/bmu, wlv/blv."""
    B = x_nchw.shape[0]
    x2d = x_nchw.reshape(B, -1).astype(jnp.float32)   # == x.view(B, -1).float()
    K = x2d.shape[1]

    w1, b1 = params["w1"], params["b1"]
    wmu, bmu = params["wmu"], params["bmu"]
    wlv, blv = params["wlv"], params["blv"]
    L = wmu.shape[1]
    assert w1.shape == (K, HIDDEN_DIM)

    # --- fuse heads [Wmu | Wlv], pad to lane-dense width NP (multiple of 128) ---
    NP = max(128, _round_up(2 * L, 128))
    wh = jnp.zeros((HIDDEN_DIM, NP), jnp.float32)
    wh = wh.at[:, :L].set(wmu).at[:, L:2 * L].set(wlv)
    bh = jnp.zeros((1, NP), jnp.float32)
    bh = bh.at[:, :L].set(bmu.reshape(1, L)).at[:, L:2 * L].set(blv.reshape(1, L))

    # --- pad reduction dim K to a multiple of the K tile (multiple of 128) ---
    TK = _round_up(K, 128) if K <= k_tile else k_tile
    Kp = _round_up(K, TK)
    if Kp != K:
        x2d = jnp.pad(x2d, ((0, 0), (0, Kp - K)))
        w1 = jnp.pad(w1, ((0, Kp - K), (0, 0)))

    # --- pad batch (sublane / MXU M dim) to >= 8 rows, tile at <= batch_tile ---
    B8 = _round_up(max(B, 8), 8)
    TB = min(batch_tile, B8)
    Bp = _round_up(B8, TB)
    if Bp != B:
        x2d = jnp.pad(x2d, ((0, Bp - B), (0, 0)))

    in_dtype = jnp.bfloat16 if use_bf16 else jnp.float32
    x2d = x2d.astype(in_dtype)
    w1 = w1.astype(in_dtype)
    wh = wh.astype(in_dtype)
    b1 = b1.reshape(1, HIDDEN_DIM).astype(jnp.float32)
    bh = bh.astype(jnp.float32)

    nb, nk = Bp // TB, Kp // TK
    isz = jnp.dtype(in_dtype).itemsize

    # VMEM budget (double-buffered x/w1/out tiles + resident heads + acc),
    # sized with headroom but capped at v7x's 64 MiB physical VMEM.
    vmem_est = (2 * TB * TK * isz
                + 2 * TK * HIDDEN_DIM * isz
                + HIDDEN_DIM * NP * isz
                + (HIDDEN_DIM + NP) * 4
                + 2 * TB * NP * 4
                + TB * HIDDEN_DIM * 4)
    vmem_limit = int(min(64 * 2**20, max(16 * 2**20, 2 * vmem_est)))

    cost = pl.CostEstimate(
        flops=2 * Bp * Kp * HIDDEN_DIM + 2 * Bp * HIDDEN_DIM * NP,
        transcendentals=Bp * NP,
        bytes_accessed=isz * (Bp * Kp + Kp * HIDDEN_DIM + HIDDEN_DIM * NP)
                       + 4 * Bp * NP,
    )

    out = pl.pallas_call(
        functools.partial(enc_fnn_kernel, latent_dim=L),
        out_shape=jax.ShapeDtypeStruct((Bp, NP), jnp.float32),
        grid_spec=pltpu.PrefetchScalarGridSpec(
            num_scalar_prefetch=0,
            grid=(nb, nk),
            in_specs=[
                pl.BlockSpec((TB, TK), lambda i, k: (i, k)),           # x tile
                pl.BlockSpec((TK, HIDDEN_DIM), lambda i, k: (k, 0)),   # W1 tile
                pl.BlockSpec((1, HIDDEN_DIM), lambda i, k: (0, 0)),    # b1
                pl.BlockSpec((HIDDEN_DIM, NP), lambda i, k: (0, 0)),   # fused heads
                pl.BlockSpec((1, NP), lambda i, k: (0, 0)),            # fused bias
            ],
            out_specs=pl.BlockSpec((TB, NP), lambda i, k: (i, 0)),
            scratch_shapes=[pltpu.VMEM((TB, HIDDEN_DIM), jnp.float32)],
        ),
        compiler_params=pltpu.CompilerParams(
            dimension_semantics=("parallel", "arbitrary"),
            vmem_limit_bytes=vmem_limit,
        ),
        cost_estimate=cost,
    )(x2d, w1, b1, wh, bh)

    mu = out[:B, :L]
    lv = out[:B, L:2 * L]
    return mu, lv


def init_params(key, in_features, hidden_dim, latent_dim):
    """Deterministic PyTorch-Linear-style init (uniform(-1/sqrt(fan_in), ...))."""
    ks = jax.random.split(key, 6)

    def linear(kw, kb, fan_in, fan_out):
        bound = 1.0 / np.sqrt(fan_in)
        w = jax.random.uniform(kw, (fan_in, fan_out), jnp.float32, -bound, bound)
        b = jax.random.uniform(kb, (1, fan_out), jnp.float32, -bound, bound)
        return w, b

    w1, b1 = linear(ks[0], ks[1], in_features, hidden_dim)
    wmu, bmu = linear(ks[2], ks[3], hidden_dim, latent_dim)
    wlv, blv = linear(ks[4], ks[5], hidden_dim, latent_dim)
    return {"w1": w1, "b1": b1, "wmu": wmu, "bmu": bmu, "wlv": wlv, "blv": blv}


if __name__ == "__main__":
    key = jax.random.PRNGKey(0)
    k_x, k_p = jax.random.split(key)

    # Small shapes: batch=2, data_dim=(4, 16, 16) -> flattened 1024 features.
    B, C, H, W = 2, 4, 16, 16
    latent_dim = 16
    data_dim = (C, H, W)

    x = jax.random.normal(k_x, (B, C, H, W), jnp.float32)
    params = init_params(k_p, int(np.prod(data_dim)), HIDDEN_DIM, latent_dim)

    # Pure-JAX reference.
    x2d = x.reshape(B, -1)
    h_ref = jnp.maximum(x2d @ params["w1"] + params["b1"], 0.0)
    mu_ref = h_ref @ params["wmu"] + params["bmu"]
    lv_ref = jax.nn.softmax(h_ref @ params["wlv"] + params["blv"], axis=-1) + ETA

    # 1) f32, single K step.
    mu, lv = enc_fnn_forward(x, params)
    jax.block_until_ready((mu, lv))
    assert mu.shape == (B, latent_dim) and lv.shape == (B, latent_dim)
    assert np.allclose(np.asarray(mu), np.asarray(mu_ref), rtol=1e-5, atol=1e-5)
    assert np.allclose(np.asarray(lv), np.asarray(lv_ref), rtol=1e-5, atol=1e-5)

    # 2) f32, multi-step K reduction (exercises the accumulator grid axis).
    mu2, lv2 = enc_fnn_forward(x, params, k_tile=512)
    jax.block_until_ready((mu2, lv2))
    assert np.allclose(np.asarray(mu2), np.asarray(mu_ref), rtol=1e-5, atol=1e-5)
    assert np.allclose(np.asarray(lv2), np.asarray(lv_ref), rtol=1e-5, atol=1e-5)

    # 3) bf16 MXU inputs (f32 accumulation) — looser tolerance.
    mu3, lv3 = enc_fnn_forward(x, params, use_bf16=True)
    jax.block_until_ready((mu3, lv3))
    assert np.allclose(np.asarray(mu3), np.asarray(mu_ref), rtol=2e-2, atol=2e-2)
    assert np.allclose(np.asarray(lv3), np.asarray(lv_ref), rtol=2e-2, atol=2e-2)

    print("KERNEL_OK")
</pallas_src>

<mosaic_0001>
module attributes {stable_mosaic.version = 11 : i64} {
  func.func @enc_fnn_kernel(%arg0: i32, %arg1: i32, %arg2: memref<8x1024xf32, #tpu.memory_space<vmem>>, %arg3: memref<1024x128xf32, #tpu.memory_space<vmem>>, %arg4: memref<1x128xf32, #tpu.memory_space<vmem>>, %arg5: memref<128x128xf32, #tpu.memory_space<vmem>>, %arg6: memref<1x128xf32, #tpu.memory_space<vmem>>, %arg7: memref<8x128xf32, #tpu.memory_space<vmem>>, %arg8: memref<8x128xf32, #tpu.memory_space<vmem>>) attributes {dimension_semantics = [#tpu.dimension_semantics<parallel>, #tpu.dimension_semantics<arbitrary>], iteration_bounds = array<i64: 1, 1>, scalar_prefetch = 0 : i64, scratch_operands = 1 : i64, tpu.core_type = #tpu.core_type<tc>, window_params = [{transform_indices = @transform_0, window_bounds = array<i64: 8, 1024>}, {transform_indices = @transform_1, window_bounds = array<i64: 1024, 128>}, {pipeline_mode = #tpu.pipeline_mode<synchronous>, transform_indices = @transform_2, window_bounds = array<i64: 1, 128>}, {pipeline_mode = #tpu.pipeline_mode<synchronous>, transform_indices = @transform_3, window_bounds = array<i64: 128, 128>}, {pipeline_mode = #tpu.pipeline_mode<synchronous>, transform_indices = @transform_4, window_bounds = array<i64: 1, 128>}, {transform_indices = @transform_5, window_bounds = array<i64: 8, 128>}]} {
    %c0_i32 = arith.constant 0 : i32
    %0 = arith.cmpi eq, %arg1, %c0_i32 : i32
    %1 = arith.extui %0 : i1 to i32
    %c0_i32_0 = arith.constant 0 : i32
    %2 = arith.cmpi ne, %1, %c0_i32_0 : i32
    scf.if %2 {
      %cst_10 = arith.constant 0.000000e+00 : f32
      %12 = vector.broadcast %cst_10 : f32 to vector<8x128xf32>
      %c0_11 = arith.constant 0 : index
      %c0_12 = arith.constant 0 : index
      %13 = vector.load %arg8[%c0_11, %c0_12] : memref<8x128xf32, #tpu.memory_space<vmem>>, vector<8x128xf32>
      tpu.vector_store %arg8[%c0_11, %c0_12], %12 {strides = array<i32>} : memref<8x128xf32, #tpu.memory_space<vmem>>, vector<8x128xf32>,
    } else {
    }
    %c0 = arith.constant 0 : index
    %c0_1 = arith.constant 0 : index
    %3 = vector.load %arg8[%c0, %c0_1] : memref<8x128xf32, #tpu.memory_space<vmem>>, vector<8x128xf32>
    %c0_2 = arith.constant 0 : index
    %c0_3 = arith.constant 0 : index
    %4 = vector.load %arg2[%c0_2, %c0_3] : memref<8x1024xf32, #tpu.memory_space<vmem>>, vector<8x1024xf32>
    %c0_4 = arith.constant 0 : index
    %c0_5 = arith.constant 0 : index
    %5 = vector.load %arg3[%c0_4, %c0_5] : memref<1024x128xf32, #tpu.memory_space<vmem>>, vector<1024x128xf32>
    %cst = arith.constant dense<0.000000e+00> : vector<8x128xf32>
    %6 = tpu.matmul %4, %5, %cst {dimension_numbers = #tpu.dot_dimension_numbers<[1], [0], [0], [1], [0, 0, 1, 1], [], []>} : vector<8x1024xf32>, vector<1024x128xf32>, vector<8x128xf32> -> vector<8x128xf32>
    %7 = arith.addf %3, %6 : vector<8x128xf32>
    %c0_6 = arith.constant 0 : index
    %c0_7 = arith.constant 0 : index
    %8 = vector.load %arg8[%c0_6, %c0_7] : memref<8x128xf32, #tpu.memory_space<vmem>>, vector<8x128xf32>
    tpu.vector_store %arg8[%c0_6, %c0_7], %7 {strides = array<i32>} : memref<8x128xf32, #tpu.memory_space<vmem>>, vector<8x128xf32>,
    %c0_i32_8 = arith.constant 0 : i32
    %9 = arith.cmpi eq, %arg1, %c0_i32_8 : i32
    %10 = arith.extui %9 : i1 to i32
    %c0_i32_9 = arith.constant 0 : i32
    %11 = arith.cmpi ne, %10, %c0_i32_9 : i32
    scf.if %11 {
      %c0_10 = arith.constant 0 : index
      %c0_11 = arith.constant 0 : index
      %12 = vector.load %arg8[%c0_10, %c0_11] : memref<8x128xf32, #tpu.memory_space<vmem>>, vector<8x128xf32>
      %c0_12 = arith.constant 0 : index
      %c0_13 = arith.constant 0 : index
      %13 = vector.load %arg4[%c0_12, %c0_13] : memref<1x128xf32, #tpu.memory_space<vmem>>, vector<1x128xf32>
      %14 = vector.broadcast %13 : vector<1x128xf32> to vector<8x128xf32>
      %15 = arith.addf %12, %14 : vector<8x128xf32>
      %cst_14 = arith.constant 0.000000e+00 : f32
      %16 = vector.broadcast %cst_14 : f32 to vector<8x128xf32>
      %17 = arith.maximumf %15, %16 : vector<8x128xf32>
      %c0_15 = arith.constant 0 : index
      %c0_16 = arith.constant 0 : index
      %18 = vector.load %arg5[%c0_15, %c0_16] : memref<128x128xf32, #tpu.memory_space<vmem>>, vector<128x128xf32>
      %cst_17 = arith.constant dense<0.000000e+00> : vector<8x128xf32>
      %19 = tpu.matmul %17, %18, %cst_17 {dimension_numbers = #tpu.dot_dimension_numbers<[1], [0], [0], [1], [0, 0, 1, 1], [], []>} : vector<8x128xf32>, vector<128x128xf32>, vector<8x128xf32> -> vector<8x128xf32>
      %c0_18 = arith.constant 0 : index
      %c0_19 = arith.constant 0 : index
      %20 = vector.load %arg6[%c0_18, %c0_19] : memref<1x128xf32, #tpu.memory_space<vmem>>, vector<1x128xf32>
      %21 = vector.broadcast %20 : vector<1x128xf32> to vector<8x128xf32>
      %22 = arith.addf %19, %21 : vector<8x128xf32>
      %23 = tpu.iota {dimensions = array<i32: 1>} : vector<8x128xi32>
      %c16_i32 = arith.constant 16 : i32
      %24 = vector.broadcast %c16_i32 : i32 to vector<8x128xi32>
      %25 = arith.cmpi sge, %23, %24 : vector<8x128xi32>
      %c32_i32 = arith.constant 32 : i32
      %26 = vector.broadcast %c32_i32 : i32 to vector<8x128xi32>
      %27 = arith.cmpi slt, %23, %26 : vector<8x128xi32>
      %28 = arith.andi %25, %27 : vector<8x128xi1>
      %cst_20 = arith.constant 0xFF800000 : f32
      %29 = vector.broadcast %cst_20 : f32 to vector<8x128xf32>
      %30 = arith.select %28, %22, %29 : vector<8x128xi1>, vector<8x128xf32>
      %cst_21 = arith.constant dense<0xFF800000> : vector<8xf32>
      %31 = vector.multi_reduction <maximumf>, %30, %cst_21 [1] : vector<8x128xf32> to vector<8xf32>
      %32 = vector.shape_cast %31 : vector<8xf32> to vector<8x1xf32>
      %33 = vector.broadcast %32 : vector<8x1xf32> to vector<8x128xf32>
      %34 = arith.subf %22, %33 : vector<8x128xf32>
      %35 = math.exp %34 : vector<8x128xf32>
      %cst_22 = arith.constant 0.000000e+00 : f32
      %36 = vector.broadcast %cst_22 : f32 to vector<8x128xf32>
      %37 = arith.select %28, %35, %36 : vector<8x128xi1>, vector<8x128xf32>
      %cst_23 = arith.constant dense<0.000000e+00> : vector<8xf32>
      %38 = vector.multi_reduction <add>, %37, %cst_23 [1] : vector<8x128xf32> to vector<8xf32>
      %39 = vector.shape_cast %38 : vector<8xf32> to vector<8x1xf32>
      %40 = tpu.reciprocal %39 : vector<8x1xf32> -> vector<8x1xf32>
      %41 = vector.broadcast %40 : vector<8x1xf32> to vector<8x128xf32>
      %42 = arith.mulf %37, %41 : vector<8x128xf32>
      %c16_i32_24 = arith.constant 16 : i32
      %43 = vector.broadcast %c16_i32_24 : i32 to vector<8x128xi32>
      %44 = arith.cmpi slt, %23, %43 : vector<8x128xi32>
      %cst_25 = arith.constant 9.99999997E-7 : f32
      %45 = vector.broadcast %cst_25 : f32 to vector<8x128xf32>
      %46 = arith.addf %42, %45 : vector<8x128xf32>
      %47 = arith.select %44, %22, %46 : vector<8x128xi1>, vector<8x128xf32>
      %c0_26 = arith.constant 0 : index
      %c0_27 = arith.constant 0 : index
      %48 = vector.load %arg7[%c0_26, %c0_27] : memref<8x128xf32, #tpu.memory_space<vmem>>, vector<8x128xf32>
      tpu.vector_store %arg7[%c0_26, %c0_27], %47 {strides = array<i32>} : memref<8x128xf32, #tpu.memory_space<vmem>>, vector<8x128xf32>,
    } else {
    }
    return
  }
  func.func @transform_0(%arg0: i32, %arg1: i32) -> (i32, i32) {
    %c0_i32 = arith.constant 0 : i32
    return %arg0, %arg1 : i32, i32
  }
  func.func @transform_1(%arg0: i32, %arg1: i32) -> (i32, i32) {
    %c0_i32 = arith.constant 0 : i32
    %c0_i32_0 = arith.constant 0 : i32
    return %arg1, %c0_i32 : i32, i32
  }
  func.func @transform_2(%arg0: i32, %arg1: i32) -> (i32, i32) {
    %c0_i32 = arith.constant 0 : i32
    %c0_i32_0 = arith.constant 0 : i32
    %c0_i32_1 = arith.constant 0 : i32
    return %c0_i32, %c0_i32_0 : i32, i32
  }
  func.func @transform_3(%arg0: i32, %arg1: i32) -> (i32, i32) {
    %c0_i32 = arith.constant 0 : i32
    %c0_i32_0 = arith.constant 0 : i32
    %c0_i32_1 = arith.constant 0 : i32
    return %c0_i32, %c0_i32_0 : i32, i32
  }
  func.func @transform_4(%arg0: i32, %arg1: i32) -> (i32, i32) {
    %c0_i32 = arith.constant 0 : i32
    %c0_i32_0 = arith.constant 0 : i32
    %c0_i32_1 = arith.constant 0 : i32
    return %c0_i32, %c0_i32_0 : i32, i32
  }
  func.func @transform_5(%arg0: i32, %arg1: i32) -> (i32, i32) {
    %c0_i32 = arith.constant 0 : i32
    %c0_i32_0 = arith.constant 0 : i32
    return %arg0, %c0_i32 : i32, i32
  }
}

</mosaic_0001>

<bundles_post_ra>
// kernel: tpu_custom_call.1
= control target key start
LH: loop header
LB: loop body
LE: loop exit
PB: predicated region body
PF: predicated region fallthrough
CT: control target
= control target key end

     0   :  { %10 = vsyncpa [#allocation4], 0  ;;  %s1178_s0 = inlined_call_operand.hbm [shape: f32[8,1024], index: 0, kind: input, shape index: {}]   ;;  %s1179_s1 = inlined_call_operand.hbm [shape: f32[1024,128], index: 1, kind: input, shape index: {}]   ;;  %s1180_s2 = inlined_call_operand.vmem [shape: f32[1,128], index: 2, kind: input, shape index: {}]   ;;  %s1181_s3 = inlined_call_operand.hbm [shape: f32[128,128], index: 3, kind: input, shape index: {}]   ;;  %s1182_s4 = inlined_call_operand.vmem [shape: f32[1,128], index: 4, kind: input, shape index: {}]   ;;  %s1183_s5 = inlined_call_operand.hbm [shape: f32[8,128], index: 5, kind: output, shape index: {}]  }
   0x1   :  { %11 = vsyncpa [#allocation7], 0 }
   0x2   :  { %12 = vsyncpa [#allocation5], 0  ;;  %s1079_s18 = smov [#allocation6]   ;;  %s985_s22 = scalar_lea.hbm %s1179_s1, 16384 }
   0x3   :  { %s28_s19 = sshll.u32 %s1079_s18, 4  ;;  %p986_p0 = scmp.ne.s32.totalorder %s1179_s1, %s985_s22  ;;  %s29_s19 = int_to_ptr.vmem [resolvable:$true] %s28_s19 }
   0x4   :  { %p989_p1 = scmp.lt.u32.totalorder %s985_s22, %s1179_s1 }
   0x6   :  { %p991_p2 = pnand %p989_p1, %p986_p0 }
   0x8   :  { %994 = shalt.err (!%p991_p2)
}
   0x9   :  { %s995_s27 = scalar_lea.vmem %s29_s19, 16384  ;;  %p1000_p4 = scmp.lt.s32.totalorder %s29_s19, %s29_s19 }
   0xa   :  { %p996_p3 = scmp.ne.s32.totalorder %s29_s19, %s995_s27  ;;  %p1001_p5 = scmp.lt.s32.totalorder %s995_s27, %s995_s27 }
   0xc   :  { %p1002_p6 = por %p1001_p5, %p1000_p4 }
   0xe   :  { %p1003_p7 = pnand %p1002_p6, %p996_p3 }
  0x10   :  { %1006 = shalt.err (!%p1003_p7)
}
  0x11   :  { %s1080_s28 = smov 128   ;;  %s1081_s29 = smov 8  }
  0x12   :  { %34 = dma.hbm_to_vmem [thread:$0]  %s1179_s1, 16384, %s29_s19, [#allocation7], %s1080_s28, %s1080_s28, %s1081_s29  }
  0x13   :  { %s1082_s7 = smov [#allocation3]   ;;  %s1083_s9 = smov [#allocation8]  }
  0x14   :  { %s19_s8 = sshll.u32 %s1082_s7, 4  ;;  %s42_s10 = sshll.u32 %s1083_s9, 4  ;;  %s20_s8 = int_to_ptr.vmem [resolvable:$true] %s19_s8  ;;  %s43_s10 = int_to_ptr.vmem [resolvable:$true] %s42_s10 }
  0x15   :  { %s1007_s13 = scalar_lea.hbm %s1178_s0, 1024 }
  0x16   :  { %p1008_p8 = scmp.ne.s32.totalorder %s1178_s0, %s1007_s13  ;;  %p1011_p9 = scmp.lt.u32.totalorder %s1007_s13, %s1178_s0 }
  0x18   :  { %p1013_p10 = pnand %p1011_p9, %p1008_p8 }
  0x1a   :  { %1016 = shalt.err (!%p1013_p10)
}
  0x1b   :  { %s1017_s1 = scalar_lea.vmem %s20_s8, 1024  ;;  %p1022_p12 = scmp.lt.s32.totalorder %s20_s8, %s20_s8 }
  0x1c   :  { %p1018_p11 = scmp.ne.s32.totalorder %s20_s8, %s1017_s1  ;;  %p1023_p13 = scmp.lt.s32.totalorder %s1017_s1, %s1017_s1 }
  0x1e   :  { %p1024_p0 = por %p1023_p13, %p1022_p12 }
  0x20   :  { %p1025_p1 = pnand %p1024_p0, %p1018_p11 }
  0x22   :  { %1028 = shalt.err (!%p1025_p1)
}
  0x23   :  { %22 = dma.hbm_to_vmem [thread:$0]  %s1178_s0, 1024, %s20_s8, [#allocation4]  }
  0x24   :  { %s1029_s22 = scalar_lea.hbm %s1181_s3, 2048 }
  0x25   :  { %p1030_p2 = scmp.ne.s32.totalorder %s1181_s3, %s1029_s22  ;;  %p1033_p3 = scmp.lt.u32.totalorder %s1029_s22, %s1181_s3 }
  0x27   :  { %p1035_p4 = pnand %p1033_p3, %p1030_p2 }
  0x29   :  { %1038 = shalt.err (!%p1035_p4)
}
  0x2a   :  { %s1039_s27 = scalar_lea.vmem %s43_s10, 2048  ;;  %p1044_p6 = scmp.lt.s32.totalorder %s43_s10, %s43_s10 }
  0x2b   :  { %p1040_p5 = scmp.ne.s32.totalorder %s43_s10, %s1039_s27  ;;  %p1045_p7 = scmp.lt.s32.totalorder %s1039_s27, %s1039_s27 }
  0x2d   :  { %p1046_p8 = por %p1045_p7, %p1044_p6 }
  0x2f   :  { %p1047_p9 = pnand %p1046_p8, %p1040_p5 }
  0x31   :  { %1050 = shalt.err (!%p1047_p9)
}
  0x32   :  { %48 = dma.hbm_to_vmem [thread:$0]  %s1181_s3, 2048, %s43_s10, [#allocation7], %s1080_s28, %s1080_s28, %s1081_s29  }
  0x33   :  { %1073 = dma.done.wait [#allocation4], 1024  }
  0x34   :  { %1074 = vsyncadd [#allocation4], 4294966272 }
  0x35   :  { %1075 = dma.done.wait [#allocation7], 18432  }
  0x36   :  { %1076 = vsyncadd [#allocation7], 4294948864  ;;  %v90_v0 = vld [vmem:[#allocation6 + $0x80] sm:$0xff]  ;;  %v91_v1 = vld [vmem:[#allocation6 + $0x88] sm:$0xff]  ;;  %vm1085_vm0 = vmmov 0  }
  0x37   :  { %v122_v2 = vld [vmem:[#allocation6 + $0x180] sm:$0xff]  ;;  %v820_v3 = vpack.c.bf16 %v91_v1, %v90_v0  ;;  %v123_v4 = vld [vmem:[#allocation6 + $0x188] sm:$0xff]  ;;  %v92_v11 = vld [vmem:[#allocation6 + $0x90] sm:$0xff] }
  0x38   :  { %v74_v5 = vld [vmem:[#allocation6] sm:$0xff]  ;;  %v75_v6 = vld [vmem:[#allocation6 + $0x8] sm:$0xff]  ;;  %v852_v7 = vpack.c.bf16 %v123_v4, %v122_v2  ;;  %v93_v13 = vld [vmem:[#allocation6 + $0x98] sm:$0xff] }
  0x39   :  { %v822_v8 = vpack.c.bf16 %v75_v6, %v74_v5  ;;  %v106_v9 = vld [vmem:[#allocation6 + $0x100] sm:$0xff]  ;;  %v107_v10 = vld [vmem:[#allocation6 + $0x108] sm:$0xff]  ;;  %821 = vmatprep.subr.bf16.mxu0 %v820_v3  ;;  %v124_v14 = vld [vmem:[#allocation6 + $0x190] sm:$0xff]  ;;  %v824_v16 = vpack.c.bf16 %v93_v13, %v92_v11 }
  0x3a   :  { %v854_v12 = vpack.c.bf16 %v107_v10, %v106_v9  ;;  %v125_v15 = vld [vmem:[#allocation6 + $0x198] sm:$0xff]  ;;  %853 = vmatprep.subr.bf16.mxu1 %v852_v7  ;;  %v76_v18 = vld [vmem:[#allocation6 + $0x10] sm:$0xff]  ;;  %v94_v23 = vld [vmem:[#allocation6 + $0xa0] sm:$0xff] }
  0x3b   :  { %823 = vmatpush3.bf16.msra.mxu0 %v822_v8  ;;  %v856_v17 = vpack.c.bf16 %v125_v15, %v124_v14  ;;  %v77_v19 = vld [vmem:[#allocation6 + $0x18] sm:$0xff]  ;;  %v108_v20 = vld [vmem:[#allocation6 + $0x110] sm:$0xff]  ;;  %v95_v24 = vld [vmem:[#allocation6 + $0xa8] sm:$0xff] }
  0x3c   :  { %855 = vmatpush3.bf16.msra.mxu1 %v854_v12  ;;  %v826_v21 = vpack.c.bf16 %v77_v19, %v76_v18  ;;  %v109_v22 = vld [vmem:[#allocation6 + $0x118] sm:$0xff]  ;;  %825 = vmatprep.subr.bf16.mxu0 %v824_v16  ;;  %v828_v26 = vpack.c.bf16 %v95_v24, %v94_v23  ;;  %v126_v27 = vld [vmem:[#allocation6 + $0x1a0] sm:$0xff]  ;;  %v127_v28 = vld [vmem:[#allocation6 + $0x1a8] sm:$0xff] }
  0x3d   :  { %857 = vmatprep.subr.bf16.mxu1 %v856_v17  ;;  %v858_v25 = vpack.c.bf16 %v109_v22, %v108_v20  ;;  %v78_v29 = vld [vmem:[#allocation6 + $0x20] sm:$0xff]  ;;  %v860_v30 = vpack.c.bf16 %v127_v28, %v126_v27  ;;  %v79_v31 = vld [vmem:[#allocation6 + $0x28] sm:$0xff]  ;;  %v96_v35 = vld [vmem:[#allocation6 + $0xb0] sm:$0xff] }
  0x3e   :  { %v110_v32 = vld [vmem:[#allocation6 + $0x120] sm:$0xff]  ;;  %v111_v33 = vld [vmem:[#allocation6 + $0x128] sm:$0xff]  ;;  %v830_v34 = vpack.c.bf16 %v79_v31, %v78_v29  ;;  %v97_v36 = vld [vmem:[#allocation6 + $0xb8] sm:$0xff] }
  0x3f   :  { %827 = vmatpush3.bf16.msra.mxu0 %v826_v21  ;;  %v128_v37 = vld [vmem:[#allocation6 + $0x1b0] sm:$0xff]  ;;  %v862_v38 = vpack.c.bf16 %v111_v33, %v110_v32  ;;  %v832_v39 = vpack.c.bf16 %v97_v36, %v96_v35  ;;  %v129_v40 = vld [vmem:[#allocation6 + $0x1b8] sm:$0xff]  ;;  %v98_v46 = vld [vmem:[#allocation6 + $0xc0] sm:$0xff] }
  0x40   :  { %859 = vmatpush3.bf16.msra.mxu1 %v858_v25  ;;  %829 = vmatprep.subr.bf16.mxu0 %v828_v26  ;;  %v80_v41 = vld [vmem:[#allocation6 + $0x30] sm:$0xff]  ;;  %v81_v42 = vld [vmem:[#allocation6 + $0x38] sm:$0xff]  ;;  %v864_v43 = vpack.c.bf16 %v129_v40, %v128_v37  ;;  %v99_v47 = vld [vmem:[#allocation6 + $0xc8] sm:$0xff] }
  0x41   :  { %861 = vmatprep.subr.bf16.mxu1 %v860_v30  ;;  %v112_v44 = vld [vmem:[#allocation6 + $0x130] sm:$0xff]  ;;  %v113_v45 = vld [vmem:[#allocation6 + $0x138] sm:$0xff]  ;;  %v130_v48 = vld [vmem:[#allocation6 + $0x1c0] sm:$0xff]  ;;  %v834_v50 = vpack.c.bf16 %v81_v42, %v80_v41  ;;  %v836_v52 = vpack.c.bf16 %v99_v47, %v98_v46 }
  0x42   :  { %v131_v49 = vld [vmem:[#allocation6 + $0x1c8] sm:$0xff]  ;;  %v866_v51 = vpack.c.bf16 %v113_v45, %v112_v44  ;;  %v82_v53 = vld [vmem:[#allocation6 + $0x40] sm:$0xff]  ;;  %v100_v58 = vld [vmem:[#allocation6 + $0xd0] sm:$0xff] }
  0x43   :  { %831 = vmatpush3.bf16.msra.mxu0 %v830_v34  ;;  %v83_v54 = vld [vmem:[#allocation6 + $0x48] sm:$0xff]  ;;  %v114_v55 = vld [vmem:[#allocation6 + $0x140] sm:$0xff]  ;;  %v868_v56 = vpack.c.bf16 %v131_v49, %v130_v48  ;;  %v101_v59 = vld [vmem:[#allocation6 + $0xd8] sm:$0xff] }
  0x44   :  { %863 = vmatpush3.bf16.msra.mxu1 %v862_v38  ;;  %833 = vmatprep.subr.bf16.mxu0 %v832_v39  ;;  %v115_v57 = vld [vmem:[#allocation6 + $0x148] sm:$0xff]  ;;  %v132_v60 = vld [vmem:[#allocation6 + $0x1d0] sm:$0xff]  ;;  %v133_v61 = vld [vmem:[#allocation6 + $0x1d8] sm:$0xff]  ;;  %v838_v62 = vpack.c.bf16 %v83_v54, %v82_v53  ;;  %v840_v0 = vpack.c.bf16 %v101_v59, %v100_v58 }
  0x45   :  { %865 = vmatprep.subr.bf16.mxu1 %v864_v43  ;;  %v870_v63 = vpack.c.bf16 %v115_v57, %v114_v55  ;;  %v84_v1 = vld [vmem:[#allocation6 + $0x50] sm:$0xff]  ;;  %v85_v2 = vld [vmem:[#allocation6 + $0x58] sm:$0xff]  ;;  %v872_v4 = vpack.c.bf16 %v133_v61, %v132_v60  ;;  %v102_v6 = vld [vmem:[#allocation6 + $0xe0] sm:$0xff] }
  0x46   :  { %v116_v3 = vld [vmem:[#allocation6 + $0x150] sm:$0xff]  ;;  %v117_v5 = vld [vmem:[#allocation6 + $0x158] sm:$0xff]  ;;  %v103_v7 = vld [vmem:[#allocation6 + $0xe8] sm:$0xff]  ;;  %v842_v10 = vpack.c.bf16 %v85_v2, %v84_v1 }
  0x47   :  { %835 = vmatpush3.bf16.msra.mxu0 %v834_v50  ;;  %v134_v8 = vld [vmem:[#allocation6 + $0x1e0] sm:$0xff]  ;;  %v135_v9 = vld [vmem:[#allocation6 + $0x1e8] sm:$0xff]  ;;  %v874_v13 = vpack.c.bf16 %v117_v5, %v116_v3  ;;  %v844_v14 = vpack.c.bf16 %v103_v7, %v102_v6  ;;  %v69_v17 = vld [vmem:[#allocation3 + $0x18] sm:$0xff] }
  0x48   :  { %867 = vmatpush3.bf16.msra.mxu1 %v866_v51  ;;  %837 = vmatprep.subr.bf16.mxu0 %v836_v52  ;;  %v86_v11 = vld [vmem:[#allocation6 + $0x60] sm:$0xff]  ;;  %v87_v12 = vld [vmem:[#allocation6 + $0x68] sm:$0xff]  ;;  %v876_v18 = vpack.c.bf16 %v135_v9, %v134_v8  ;;  %v104_v20 = vld [vmem:[#allocation6 + $0xf0] sm:$0xff] }
  0x49   :  { %869 = vmatprep.subr.bf16.mxu1 %v868_v56  ;;  %v118_v15 = vld [vmem:[#allocation6 + $0x160] sm:$0xff]  ;;  %v67_v16 = vld [vmem:[#allocation3 + $0x8] sm:$0xff]  ;;  %v105_v21 = vld [vmem:[#allocation6 + $0xf8] sm:$0xff]  ;;  %336 = vmatprep.mubr.f32.mxu1 %v69_v17  ;;  %v846_v24 = vpack.c.bf16 %v87_v12, %v86_v11 }
  0x4a   :  { %v119_v19 = vld [vmem:[#allocation6 + $0x168] sm:$0xff]  ;;  %266 = vmatprep.mubr.f32.mxu0 %v67_v16  ;;  %v136_v22 = vld [vmem:[#allocation6 + $0x1f0] sm:$0xff]  ;;  %v137_v23 = vld [vmem:[#allocation6 + $0x1f8] sm:$0xff]  ;;  %v848_v26 = vpack.c.bf16 %v105_v21, %v104_v20 }
  0x4b   :  { %839 = vmatpush3.bf16.msra.mxu0 %v838_v62  ;;  %v878_v25 = vpack.c.bf16 %v119_v19, %v118_v15  ;;  %v88_v27 = vld [vmem:[#allocation6 + $0x70] sm:$0xff]  ;;  %v89_v28 = vld [vmem:[#allocation6 + $0x78] sm:$0xff]  ;;  %v880_v30 = vpack.c.bf16 %v137_v23, %v136_v22  ;;  %v154_v32 = vld [vmem:[#allocation6 + $0x280] sm:$0xff] }
  0x4c   :  { %871 = vmatpush3.bf16.msra.mxu1 %v870_v63  ;;  %841 = vmatprep.subr.bf16.mxu0 %v840_v0  ;;  %v120_v29 = vld [vmem:[#allocation6 + $0x170] sm:$0xff]  ;;  %v121_v31 = vld [vmem:[#allocation6 + $0x178] sm:$0xff]  ;;  %v155_v33 = vld [vmem:[#allocation6 + $0x288] sm:$0xff]  ;;  %v850_v36 = vpack.c.bf16 %v89_v28, %v88_v27 }
  0x4d   :  { %873 = vmatprep.subr.bf16.mxu1 %v872_v4  ;;  %v186_v34 = vld [vmem:[#allocation6 + $0x380] sm:$0xff]  ;;  %v187_v35 = vld [vmem:[#allocation6 + $0x388] sm:$0xff]  ;;  %v882_v37 = vpack.c.bf16 %v121_v31, %v120_v29  ;;  %v884_v38 = vpack.c.bf16 %v155_v33, %v154_v32  ;;  %v156_v44 = vld [vmem:[#allocation6 + $0x290] sm:$0xff] }
  0x4e   :  { %v138_v39 = vld [vmem:[#allocation6 + $0x200] sm:$0xff]  ;;  %v139_v40 = vld [vmem:[#allocation6 + $0x208] sm:$0xff]  ;;  %v916_v42 = vpack.c.bf16 %v187_v35, %v186_v34  ;;  %v157_v45 = vld [vmem:[#allocation6 + $0x298] sm:$0xff] }
  0x4f   :  { %843 = vmatpush3.bf16.msra.mxu0 %v842_v10  ;;  %v170_v41 = vld [vmem:[#allocation6 + $0x300] sm:$0xff]  ;;  %v171_v43 = vld [vmem:[#allocation6 + $0x308] sm:$0xff]  ;;  %v188_v46 = vld [vmem:[#allocation6 + $0x390] sm:$0xff]  ;;  %v886_v50 = vpack.c.bf16 %v139_v40, %v138_v39  ;;  %v888_v52 = vpack.c.bf16 %v157_v45, %v156_v44 }
  0x50   :  { %875 = vmatpush3.bf16.msra.mxu1 %v874_v13  ;;  %845 = vmatprep.subr.bf16.mxu0 %v844_v14  ;;  %v189_v47 = vld [vmem:[#allocation6 + $0x398] sm:$0xff]  ;;  %v66_v48 = vld [vmem:[#allocation3] sm:$0xff]  ;;  %v68_v49 = vld [vmem:[#allocation3 + $0x10] sm:$0xff]  ;;  %v918_v51 = vpack.c.bf16 %v171_v43, %v170_v41 }
  0x51   :  { %877 = vmatprep.subr.bf16.mxu1 %v876_v18  ;;  %v140_v53 = vld [vmem:[#allocation6 + $0x210] sm:$0xff]  ;;  %v141_v54 = vld [vmem:[#allocation6 + $0x218] sm:$0xff]  ;;  %v920_v56 = vpack.c.bf16 %v189_v47, %v188_v46  ;;  %v158_v58 = vld [vmem:[#allocation6 + $0x2a0] sm:$0xff] }
  0x52   :  { %v172_v55 = vld [vmem:[#allocation6 + $0x310] sm:$0xff]  ;;  %v173_v57 = vld [vmem:[#allocation6 + $0x318] sm:$0xff]  ;;  %v159_v59 = vld [vmem:[#allocation6 + $0x2a8] sm:$0xff]  ;;  %v890_v62 = vpack.c.bf16 %v141_v54, %v140_v53 }
  0x53   :  { %847 = vmatpush3.bf16.msra.mxu0 %v846_v24  ;;  %v190_v60 = vld [vmem:[#allocation6 + $0x3a0] sm:$0xff]  ;;  %v191_v61 = vld [vmem:[#allocation6 + $0x3a8] sm:$0xff]  ;;  %v922_v63 = vpack.c.bf16 %v173_v57, %v172_v55  ;;  %v892_v0 = vpack.c.bf16 %v159_v59, %v158_v58  ;;  %v160_v6 = vld [vmem:[#allocation6 + $0x2b0] sm:$0xff] }
  0x54   :  { %879 = vmatpush3.bf16.msra.mxu1 %v878_v25  ;;  %849 = vmatprep.subr.bf16.mxu0 %v848_v26  ;;  %v142_v1 = vld [vmem:[#allocation6 + $0x220] sm:$0xff]  ;;  %v143_v2 = vld [vmem:[#allocation6 + $0x228] sm:$0xff]  ;;  %v924_v4 = vpack.c.bf16 %v191_v61, %v190_v60  ;;  %v161_v7 = vld [vmem:[#allocation6 + $0x2b8] sm:$0xff] }
  0x55   :  { %881 = vmatprep.subr.bf16.mxu1 %v880_v30  ;;  %v174_v3 = vld [vmem:[#allocation6 + $0x320] sm:$0xff]  ;;  %v175_v5 = vld [vmem:[#allocation6 + $0x328] sm:$0xff]  ;;  %v192_v8 = vld [vmem:[#allocation6 + $0x3b0] sm:$0xff]  ;;  %v894_v10 = vpack.c.bf16 %v143_v2, %v142_v1  ;;  %v896_v12 = vpack.c.bf16 %v161_v7, %v160_v6 }
  0x56   :  { %v193_v9 = vld [vmem:[#allocation6 + $0x3b8] sm:$0xff]  ;;  %v926_v11 = vpack.c.bf16 %v175_v5, %v174_v3  ;;  %v144_v13 = vld [vmem:[#allocation6 + $0x230] sm:$0xff]  ;;  %v162_v18 = vld [vmem:[#allocation6 + $0x2c0] sm:$0xff] }
  0x57   :  { %851 = vmatpush3.bf16.msra.mxu0 %v850_v36  ;;  %v145_v14 = vld [vmem:[#allocation6 + $0x238] sm:$0xff]  ;;  %v176_v15 = vld [vmem:[#allocation6 + $0x330] sm:$0xff]  ;;  %v928_v16 = vpack.c.bf16 %v193_v9, %v192_v8  ;;  %v163_v19 = vld [vmem:[#allocation6 + $0x2c8] sm:$0xff] }
  0x58   :  { %883 = vmatpush3.bf16.msra.mxu1 %v882_v37  ;;  %885 = vmatprep.subr.bf16.mxu0 %v884_v38  ;;  %v177_v17 = vld [vmem:[#allocation6 + $0x338] sm:$0xff]  ;;  %v194_v20 = vld [vmem:[#allocation6 + $0x3c0] sm:$0xff]  ;;  %v195_v21 = vld [vmem:[#allocation6 + $0x3c8] sm:$0xff]  ;;  %v898_v22 = vpack.c.bf16 %v145_v14, %v144_v13  ;;  %v900_v26 = vpack.c.bf16 %v163_v19, %v162_v18 }
  0x59   :  { %917 = vmatprep.subr.bf16.mxu1 %v916_v42  ;;  %v71_v23 = vld [vmem:[#allocation3 + $0x28] sm:$0xff]  ;;  %v73_v24 = vld [vmem:[#allocation3 + $0x38] sm:$0xff]  ;;  %v930_v25 = vpack.c.bf16 %v177_v17, %v176_v15  ;;  %v146_v27 = vld [vmem:[#allocation6 + $0x240] sm:$0xff]  ;;  %v932_v30 = vpack.c.bf16 %v195_v21, %v194_v20 }
  0x5a   :  { %267 = vmatmul.mubr.f32.vlgmr.msra.gmra.mrb[0].mxu0 %v66_v48  ;;  %v147_v28 = vld [vmem:[#allocation6 + $0x248] sm:$0xff]  ;;  %v178_v29 = vld [vmem:[#allocation6 + $0x340] sm:$0xff]  ;;  %v164_v32 = vld [vmem:[#allocation6 + $0x2d0] sm:$0xff] }
  0x5b   :  { %337 = vmatmul.mubr.f32.vlgmr.msra.gmra.mrb[0].mxu1 %v68_v49  ;;  %887 = vmatpush3.bf16.msra.mxu0 %v886_v50  ;;  %v179_v31 = vld [vmem:[#allocation6 + $0x348] sm:$0xff]  ;;  %v165_v33 = vld [vmem:[#allocation6 + $0x2d8] sm:$0xff]  ;;  %v196_v34 = vld [vmem:[#allocation6 + $0x3d0] sm:$0xff]  ;;  %v902_v36 = vpack.c.bf16 %v147_v28, %v146_v27 }
  0x5c   :  { %919 = vmatpush3.bf16.msra.mxu1 %v918_v51  ;;  %889 = vmatprep.subr.bf16.mxu0 %v888_v52  ;;  %v197_v35 = vld [vmem:[#allocation6 + $0x3d8] sm:$0xff]  ;;  %v934_v37 = vpack.c.bf16 %v179_v31, %v178_v29  ;;  %v904_v38 = vpack.c.bf16 %v165_v33, %v164_v32  ;;  %v148_v39 = vld [vmem:[#allocation6 + $0x250] sm:$0xff]  ;;  %v166_v44 = vld [vmem:[#allocation6 + $0x2e0] sm:$0xff]  ;;  %v1086_v33 = vmov 0.0  }
  0x5d   :  { %921 = vmatprep.subr.bf16.mxu1 %v920_v56  ;;  %406 = vmatprep.mubr.f32.mxu0 %v71_v23  ;;  %v149_v40 = vld [vmem:[#allocation6 + $0x258] sm:$0xff]  ;;  %v180_v41 = vld [vmem:[#allocation6 + $0x350] sm:$0xff]  ;;  %v936_v42 = vpack.c.bf16 %v197_v35, %v196_v34  ;;  %v167_v45 = vld [vmem:[#allocation6 + $0x2e8] sm:$0xff] }
  0x5e   :  { %476 = vmatprep.mubr.f32.mxu1 %v73_v24  ;;  %v181_v43 = vld [vmem:[#allocation6 + $0x358] sm:$0xff]  ;;  %v198_v46 = vld [vmem:[#allocation6 + $0x3e0] sm:$0xff]  ;;  %v199_v47 = vld [vmem:[#allocation6 + $0x3e8] sm:$0xff]  ;;  %v906_v48 = vpack.c.bf16 %v149_v40, %v148_v39  ;;  %v908_v50 = vpack.c.bf16 %v167_v45, %v166_v44 }
  0x5f   :  { %891 = vmatpush3.bf16.msra.mxu0 %v890_v62  ;;  %v938_v49 = vpack.c.bf16 %v181_v43, %v180_v41  ;;  %v150_v51 = vld [vmem:[#allocation6 + $0x260] sm:$0xff]  ;;  %v151_v52 = vld [vmem:[#allocation6 + $0x268] sm:$0xff]  ;;  %v940_v54 = vpack.c.bf16 %v199_v47, %v198_v46  ;;  %v168_v56 = vld [vmem:[#allocation6 + $0x2f0] sm:$0xff] }
  0x60   :  { %923 = vmatpush3.bf16.msra.mxu1 %v922_v63  ;;  %893 = vmatprep.subr.bf16.mxu0 %v892_v0  ;;  %v182_v53 = vld [vmem:[#allocation6 + $0x360] sm:$0xff]  ;;  %v183_v55 = vld [vmem:[#allocation6 + $0x368] sm:$0xff]  ;;  %v169_v57 = vld [vmem:[#allocation6 + $0x2f8] sm:$0xff]  ;;  %v910_v60 = vpack.c.bf16 %v151_v52, %v150_v51  ;;  %v590_v52 = vlaneseq }
  0x61   :  { %925 = vmatprep.subr.bf16.mxu1 %v924_v4  ;;  %v200_v58 = vld [vmem:[#allocation6 + $0x3f0] sm:$0xff]  ;;  %v201_v59 = vld [vmem:[#allocation6 + $0x3f8] sm:$0xff]  ;;  %v942_v61 = vpack.c.bf16 %v183_v55, %v182_v53  ;;  %v912_v62 = vpack.c.bf16 %v169_v57, %v168_v56  ;;  %v70_v6 = vld [vmem:[#allocation3 + $0x20] sm:$0xff] }
  0x62   :  { %v152_v63 = vld [vmem:[#allocation6 + $0x270] sm:$0xff]  ;;  %v153_v0 = vld [vmem:[#allocation6 + $0x278] sm:$0xff]  ;;  %v944_v1 = vpack.c.bf16 %v201_v59, %v200_v58  ;;  %v497_v8 = vld [vmem:[#allocation8] sm:$0xff]  ;;  %v591_v53 = vand.u32 127, %v590_v52 }
  0x63   :  { %895 = vmatpush3.bf16.msra.mxu0 %v894_v10  ;;  %v184_v2 = vld [vmem:[#allocation6 + $0x370] sm:$0xff]  ;;  %v185_v3 = vld [vmem:[#allocation6 + $0x378] sm:$0xff]  ;;  %v914_v4 = vpack.c.bf16 %v153_v0, %v152_v63  ;;  %v498_v9 = vld [vmem:[#allocation8 + $0x8] sm:$0xff] }
  0x64   :  { %927 = vmatpush3.bf16.msra.mxu1 %v926_v11  ;;  %897 = vmatprep.subr.bf16.mxu0 %v896_v12  ;;  %v946_v5 = vpack.c.bf16 %v185_v3, %v184_v2  ;;  %v72_v7 = vld [vmem:[#allocation3 + $0x30] sm:$0xff]  ;;  %v1084_v11 = vmov 0.0|0.0   ;;  %v949_v12 = vpack.c.bf16 %v498_v9, %v497_v8  ;;  %v500_v13 = vld [vmem:[#allocation8 + $0x18] sm:$0xff]  ;;  %v501_v15 = vld [vmem:[#allocation8 + $0x20] sm:$0xff]  ;;  %vm592_vm1 = vcmp.ge.s32.totalorder %v591_v53, 16 }
  0x65   :  { %929 = vmatprep.subr.bf16.mxu1 %v928_v16  ;;  %v499_v10 = vld [vmem:[#allocation8 + $0x10] sm:$0xff]  ;;  %v502_v16 = vld [vmem:[#allocation8 + $0x28] sm:$0xff]  ;;  %v504_v19 = vld [vmem:[#allocation8 + $0x38] sm:$0xff]  ;;  %vm593_vm2 = vcmp.lt.s32.totalorder %v591_v53, 32  ;;  %vm606_vm4 = vcmp.lt.s32.totalorder %v591_v53, 16 }
  0x66   :  { %v952_v14 = vpack.c.bf16 %v500_v13, %v499_v10  ;;  %v955_v17 = vpack.c.bf16 %v502_v16, %v501_v15  ;;  %v503_v18 = vld [vmem:[#allocation8 + $0x30] sm:$0xff]  ;;  %v505_v21 = vld [vmem:[#allocation8 + $0x40] sm:$0xff]  ;;  %v510_v28 = vld [vmem:[#allocation8 + $0x68] sm:$0xff] }
  0x67   :  { %899 = vmatpush3.bf16.msra.mxu0 %v898_v22  ;;  %v958_v20 = vpack.c.bf16 %v504_v19, %v503_v18  ;;  %v506_v22 = vld [vmem:[#allocation8 + $0x48] sm:$0xff]  ;;  %v507_v24 = vld [vmem:[#allocation8 + $0x50] sm:$0xff]  ;;  %v509_v27 = vld [vmem:[#allocation8 + $0x60] sm:$0xff] }
  0x68   :  { %931 = vmatpush3.bf16.msra.mxu1 %v930_v25  ;;  %901 = vmatprep.subr.bf16.mxu0 %v900_v26  ;;  %v961_v23 = vpack.c.bf16 %v506_v22, %v505_v21  ;;  %v508_v25 = vld [vmem:[#allocation8 + $0x58] sm:$0xff]  ;;  %v967_v29 = vpack.c.bf16 %v510_v28, %v509_v27  ;;  %vm594_vm3 = vmand %vm592_vm1, %vm593_vm2 }
  0x69   :  { %933 = vmatprep.subr.bf16.mxu1 %v932_v30  ;;  %v964_v26 = vpack.c.bf16 %v508_v25, %v507_v24  ;;  %v511_v30 = vld [vmem:[#allocation8 + $0x70] sm:$0xff]  ;;  %v512_v31 = vld [vmem:[#allocation8 + $0x78] sm:$0xff] }
  0x6a   :  { %v970_v32 = vpack.c.bf16 %v512_v31, %v511_v30 }
  0x6b   :  { %903 = vmatpush3.bf16.msra.mxu0 %v902_v36 }
  0x6c   :  { %935 = vmatpush3.bf16.msra.mxu1 %v934_v37  ;;  %905 = vmatprep.subr.bf16.mxu0 %v904_v38 }
  0x6d   :  { %937 = vmatprep.subr.bf16.mxu1 %v936_v42 }
  0x6f   :  { %907 = vmatpush3.bf16.msra.mxu0 %v906_v48  ;;  %v626_v48 = vld [vmem:[%s1180_s2] ss:$0 sm:$0xff]  ;;  %s1087_s2 = smov [#allocation9]  }
  0x70   :  { %939 = vmatpush3.bf16.msra.mxu1 %v938_v49  ;;  %909 = vmatprep.subr.bf16.mxu0 %v908_v50  ;;  %s616_s7 = sshll.u32 %s1087_s2, 4  ;;  %s617_s7 = int_to_ptr.vmem [resolvable:$true] %s616_s7 }
  0x71   :  { %941 = vmatprep.subr.bf16.mxu1 %v940_v54  ;;  %v627_v54 = vld [vmem:[%s1182_s4] ss:$0 sm:$0xff]  ;;  %s1051_s4 = scalar_lea.vmem %s617_s7, 128  ;;  %p1056_p11 = scmp.lt.s32.totalorder %s617_s7, %s617_s7 }
  0x72   :  { %p1052_p10 = scmp.ne.s32.totalorder %s617_s7, %s1051_s4  ;;  %p1057_p12 = scmp.lt.s32.totalorder %s1051_s4, %s1051_s4 }
  0x73   :  { %911 = vmatpush3.bf16.msra.mxu0 %v910_v60 }
  0x74   :  { %943 = vmatpush3.bf16.msra.mxu1 %v942_v61  ;;  %913 = vmatprep.subr.bf16.mxu0 %v912_v62  ;;  %p1058_p13 = por %p1057_p12, %p1056_p11 }
  0x75   :  { %945 = vmatprep.subr.bf16.mxu1 %v944_v1 }
  0x76   :  { %p1059_p0 = pnand %p1058_p13, %p1052_p10 }
  0x77   :  { %915 = vmatpush3.bf16.msra.mxu0 %v914_v4 }
  0x78   :  { %947 = vmatpush3.bf16.msra.mxu1 %v946_v5  ;;  %948 = vmatprep.subr.bf16.mxu0 %v1084_v11 }
  0x7a   :  { %407 = vmatmul.mubr.f32.vlgmr.msra.gmra.mrb[2].mxu0 %v70_v6 }
  0x7b   :  { %477 = vmatmul.mubr.f32.vlgmr.msra.gmra.mrb[2].mxu1 %v72_v7  ;;  %950 = vmatpush3.bf16.msra.mxu0 %v949_v12 }
  0x7c   :  { %951 = vmatprep.subr.bf16.mxu0 %v1084_v11  ;;  %817 = vmatprep.mubr.msk.f32.mxu0 %vm1085_vm0, %v1086_v33 }
  0x7f   :  { %953 = vmatpush3.bf16.msra.mxu0 %v952_v14 }
  0x80   :  { %954 = vmatprep.subr.bf16.mxu0 %v1084_v11 }
  0x83   :  { %956 = vmatpush3.bf16.msra.mxu0 %v955_v17 }
  0x84   :  { %957 = vmatprep.subr.bf16.mxu0 %v1084_v11 }
  0x87   :  { %959 = vmatpush3.bf16.msra.mxu0 %v958_v20 }
  0x88   :  { %960 = vmatprep.subr.bf16.mxu0 %v1084_v11 }
  0x8b   :  { %962 = vmatpush3.bf16.msra.mxu0 %v961_v23 }
  0x8c   :  { %963 = vmatprep.subr.bf16.mxu0 %v1084_v11 }
  0x8f   :  { %965 = vmatpush3.bf16.msra.mxu0 %v964_v26 }
  0x90   :  { %966 = vmatprep.subr.bf16.mxu0 %v1084_v11 }
  0x93   :  { %968 = vmatpush3.bf16.msra.mxu0 %v967_v29 }
  0x94   :  { %969 = vmatprep.subr.bf16.mxu0 %v1084_v11 }
  0x97   :  { %971 = vmatpush3.bf16.msra.mxu0 %v970_v32 }
 0x12d   :  { %v660_v34 = vpop.f32.mrb[0].mxu0 }
 0x12e   :  { %v695_v35 = vpop.f32.mrb[0].mxu1  ;;  %v661_v36 = vpop.f32.mrb[1].mxu0 }
 0x12f   :  { %v662_v37 = vadd.f32 %v661_v36, %v660_v34  ;;  %v696_v38 = vpop.f32.mrb[1].mxu1 }
 0x130   :  { %v697_v39 = vadd.f32 %v696_v38, %v695_v35 }
 0x132   :  { %v339_v40 = vadd.f32 %v697_v39, %v662_v37 }
 0x14d   :  { %v730_v41 = vpop.f32.mrb[2].mxu0 }
 0x14e   :  { %v731_v42 = vpop.f32.mrb[3].mxu0  ;;  %v765_v43 = vpop.f32.mrb[2].mxu1 }
 0x14f   :  { %v732_v44 = vadd.f32 %v731_v42, %v730_v41  ;;  %v766_v45 = vpop.f32.mrb[3].mxu1 }
 0x150   :  { %v767_v46 = vadd.f32 %v766_v45, %v765_v43 }
 0x151   :  { %v409_v47 = vadd.f32 %v732_v44, %v339_v40 }
 0x153   :  { %v479_v49 = vadd.f32 %v767_v46, %v409_v47 }
 0x155   :  { %v495_v50 = vadd.f32 %v626_v48, %v479_v49 }
 0x157   :  { %v496_v51 = vmax.f32 %v495_v50, 0.0 }
 0x159   :  { %818 = vmatmul.mubr.f32.vlgmr.msra.gmra.mrb[4].mxu0 %v496_v51 }
 0x22c   :  { %v586_v55 = vpop.f32.mrb[4].mxu0 }
 0x22d   :  { %v587_v56 = vadd.f32 %v627_v54, %v586_v55  ;;  %v819_v57 = vpop.f32.mrb[5].mxu0 }
 0x22f   :  { %v595_v58 = vsel %vm594_vm3, %v587_v56, -inf }
 0x230   :  { %596 = vmax.xlane.f32.xlu0 %v595_v58 }
 0x2bd   :  { %v597_v59 = vpop.xlane.xlu0 %596 }
 0x2be   :  { %v598_v60 = vsub.f32 %v587_v56, %v597_v59 }
 0x2c0   :  { %v599_v61 = vmul.f32 1.442695, %v598_v60 }
 0x2c2   :  { %981 = vpow2.f32 %v599_v61 }
 0x2cc   :  { %v982_v62 = vpop.eup %981 }
 0x2cd   :  { %v601_v63 = vsel %vm594_vm3, %v982_v62, 0.0 }
 0x2ce   :  { %602 = vadd.xlane.f32.xlu0 %v601_v63 }
 0x35b   :  { %v603_v0 = vpop.xlane.xlu0 %602 }
 0x35c   :  { %983 = vrcp.f32 %v603_v0 }
 0x366   :  { %v984_v1 = vpop.eup %983 }
 0x367   :  { %v605_v2 = vmul.f32 %v984_v1, %v601_v63 }
 0x369   :  { %v607_v3 = vadd.f32 1e-06, %v605_v2 }
 0x36b   :  { %v608_v4 = vsel %vm606_vm4, %v587_v56, %v607_v3 }
 0x36c   :  { %609 = vst [vmem:[#allocation9] sm:$0xff] %v608_v4 }
 0x36d   :  { %1062 = shalt.err (!%p1059_p0)
}
 0x36e   :  { %s1063_s10 = scalar_lea.hbm %s1183_s5, 128 }
 0x36f   :  { %p1064_p1 = scmp.ne.s32.totalorder %s1183_s5, %s1063_s10  ;;  %p1067_p2 = scmp.lt.u32.totalorder %s1063_s10, %s1183_s5 }
 0x371   :  { %p1069_p3 = pnand %p1067_p2, %p1064_p1 }
 0x373   :  { %1072 = shalt.err (!%p1069_p3)
}
 0x374   :  { %619 = dma.vmem_to_hbm [thread:$0]  %s617_s7, 128, %s1183_s5, [#allocation5]  }
 0x375   :  { %1077 = dma.done.wait [#allocation5], 128  }
 0x376   :  { %1078 = vsyncadd [#allocation5], 4294967168 }
 0x377   :  { %623 = vsyncpa [#allocation4], 1 }
 0x378   :  { %624 = vsyncpa [#allocation7], 1 }
 0x379   :  { %625 = vsyncpa [#allocation5], 1 }

</bundles_post_ra>
